<compile_context>
chip_gen: v7x
topology: tpu7x:2x2x1
jax: 0.10.0
libtpu: 0.0.40
codegen_flags: <defaults>
</compile_context>

<pallas_src>
import functools
import math

import jax
import jax.numpy as jnp
from jax.experimental import pallas as pl
from jax.experimental.pallas import tpu as pltpu


_VMEM_LIMIT = 32 * 1024 * 1024  # safe on v5e/v6e (128 MiB) and v7x (64 MiB)


def _pick_tile_m(m):
    """Largest row tile (multiple of 8) that divides m; else the full extent."""
    for c in (512, 256, 128, 64, 32, 16, 8):
        if m >= c and m % c == 0:
            return c
    return m


def _pick_tile_n(n):
    """Lane tile: multiple of 128 if possible, else full extent."""
    for c in (512, 256, 128):
        if n % c == 0:
            return c
    return n


# ----------------------------- Pallas kernels -----------------------------

def _linear_kernel(x_ref, w_ref, b_ref, o_ref):
    # x: (TM, K) bf16, w: (K, TN) bf16, b: (1, TN) f32
    acc = jnp.dot(x_ref[...], w_ref[...], preferred_element_type=jnp.float32)
    o_ref[...] = (acc + b_ref[...]).astype(o_ref.dtype)


def pallas_linear(x, w_t, b):
    """x: (M, K), w_t: (K, N) pre-transposed bf16, b: (N,) -> (M, N) f32."""
    M, K = x.shape
    N = w_t.shape[1]
    TM = _pick_tile_m(M)
    TN = _pick_tile_n(N)
    return pl.pallas_call(
        _linear_kernel,
        grid=(M // TM, N // TN),
        in_specs=[
            pl.BlockSpec((TM, K), lambda i, j: (i, 0)),
            pl.BlockSpec((K, TN), lambda i, j: (0, j)),
            pl.BlockSpec((1, TN), lambda i, j: (0, j)),
        ],
        out_specs=pl.BlockSpec((TM, TN), lambda i, j: (i, j)),
        out_shape=jax.ShapeDtypeStruct((M, N), jnp.float32),
        compiler_params=pltpu.CompilerParams(
            dimension_semantics=("parallel", "parallel"),
            vmem_limit_bytes=_VMEM_LIMIT),
    )(x.astype(jnp.bfloat16), w_t.astype(jnp.bfloat16),
      b.reshape(1, N).astype(jnp.float32))


def _ffn_kernel(x_ref, w1_ref, b1_ref, w2_ref, b2_ref, o_ref):
    # Fused linear1 -> ReLU -> linear2 (dropout = identity).
    h = jnp.dot(x_ref[...], w1_ref[...], preferred_element_type=jnp.float32)
    h = jnp.maximum(h + b1_ref[...], 0.0)
    o = jnp.dot(h.astype(jnp.bfloat16), w2_ref[...],
                preferred_element_type=jnp.float32)
    o_ref[...] = (o + b2_ref[...]).astype(o_ref.dtype)


def pallas_ffn(x, w1_t, b1, w2_t, b2):
    """x: (M, D); w1_t: (D, F); w2_t: (F, D) -> (M, D) f32."""
    M, D = x.shape
    F = w1_t.shape[1]
    TM = _pick_tile_m(M)
    return pl.pallas_call(
        _ffn_kernel,
        grid=(M // TM,),
        in_specs=[
            pl.BlockSpec((TM, D), lambda i: (i, 0)),
            pl.BlockSpec((D, F), lambda i: (0, 0)),
            pl.BlockSpec((1, F), lambda i: (0, 0)),
            pl.BlockSpec((F, D), lambda i: (0, 0)),
            pl.BlockSpec((1, D), lambda i: (0, 0)),
        ],
        out_specs=pl.BlockSpec((TM, D), lambda i: (i, 0)),
        out_shape=jax.ShapeDtypeStruct((M, D), jnp.float32),
        compiler_params=pltpu.CompilerParams(
            dimension_semantics=("parallel",),
            vmem_limit_bytes=_VMEM_LIMIT),
    )(x.astype(jnp.bfloat16), w1_t.astype(jnp.bfloat16),
      b1.reshape(1, F).astype(jnp.float32),
      w2_t.astype(jnp.bfloat16), b2.reshape(1, D).astype(jnp.float32))


def _ln_body(x, g, b):
    mu = jnp.mean(x, axis=-1, keepdims=True)
    var = jnp.mean(jnp.square(x - mu), axis=-1, keepdims=True)
    y = (x - mu) * jax.lax.rsqrt(var + 1e-5)
    return y * g + b


def _ln_kernel(x_ref, g_ref, b_ref, o_ref):
    o_ref[...] = _ln_body(x_ref[...], g_ref[...], b_ref[...]).astype(o_ref.dtype)


def _add_ln_kernel(x_ref, r_ref, g_ref, b_ref, o_ref):
    # residual add fused into layernorm (saves one HBM round trip)
    x = x_ref[...] + r_ref[...]
    o_ref[...] = _ln_body(x, g_ref[...], b_ref[...]).astype(o_ref.dtype)


def pallas_layernorm(x, gamma, beta):
    M, D = x.shape
    TM = _pick_tile_m(M)
    return pl.pallas_call(
        _ln_kernel,
        grid=(M // TM,),
        in_specs=[
            pl.BlockSpec((TM, D), lambda i: (i, 0)),
            pl.BlockSpec((1, D), lambda i: (0, 0)),
            pl.BlockSpec((1, D), lambda i: (0, 0)),
        ],
        out_specs=pl.BlockSpec((TM, D), lambda i: (i, 0)),
        out_shape=jax.ShapeDtypeStruct((M, D), jnp.float32),
        compiler_params=pltpu.CompilerParams(
            dimension_semantics=("parallel",),
            vmem_limit_bytes=_VMEM_LIMIT),
    )(x.astype(jnp.float32), gamma.reshape(1, D), beta.reshape(1, D))


def pallas_add_layernorm(x, residual, gamma, beta):
    M, D = x.shape
    TM = _pick_tile_m(M)
    return pl.pallas_call(
        _add_ln_kernel,
        grid=(M // TM,),
        in_specs=[
            pl.BlockSpec((TM, D), lambda i: (i, 0)),
            pl.BlockSpec((TM, D), lambda i: (i, 0)),
            pl.BlockSpec((1, D), lambda i: (0, 0)),
            pl.BlockSpec((1, D), lambda i: (0, 0)),
        ],
        out_specs=pl.BlockSpec((TM, D), lambda i: (i, 0)),
        out_shape=jax.ShapeDtypeStruct((M, D), jnp.float32),
        compiler_params=pltpu.CompilerParams(
            dimension_semantics=("parallel",),
            vmem_limit_bytes=_VMEM_LIMIT),
    )(x.astype(jnp.float32), residual.astype(jnp.float32),
      gamma.reshape(1, D), beta.reshape(1, D))


def _head_kernel(x_ref, r_ref, g_ref, b_ref, w_ref, fb_ref, o_ref):
    # fused: layernorm(x + residual) -> Linear(D, 1) -> sigmoid
    y = _ln_body(x_ref[...] + r_ref[...], g_ref[...], b_ref[...])
    logit = jnp.sum(y * w_ref[...], axis=-1, keepdims=True) + fb_ref[...]
    o_ref[...] = jax.nn.sigmoid(logit).astype(o_ref.dtype)


def pallas_head(x, residual, gamma, beta, w, b):
    """Fused final layernorm + Linear(D->1) + sigmoid. Returns (M, 1) f32."""
    M, D = x.shape
    TM = _pick_tile_m(M)
    return pl.pallas_call(
        _head_kernel,
        grid=(M // TM,),
        in_specs=[
            pl.BlockSpec((TM, D), lambda i: (i, 0)),
            pl.BlockSpec((TM, D), lambda i: (i, 0)),
            pl.BlockSpec((1, D), lambda i: (0, 0)),
            pl.BlockSpec((1, D), lambda i: (0, 0)),
            pl.BlockSpec((1, D), lambda i: (0, 0)),
            pl.BlockSpec((1, 1), lambda i: (0, 0)),
        ],
        out_specs=pl.BlockSpec((TM, 1), lambda i: (i, 0)),
        out_shape=jax.ShapeDtypeStruct((M, 1), jnp.float32),
        compiler_params=pltpu.CompilerParams(
            dimension_semantics=("parallel",),
            vmem_limit_bytes=_VMEM_LIMIT),
    )(x.astype(jnp.float32), residual.astype(jnp.float32),
      gamma.reshape(1, D), beta.reshape(1, D),
      w.reshape(1, D).astype(jnp.float32), b.reshape(1, 1).astype(jnp.float32))


def _attn_kernel(q_ref, k_ref, v_ref, m_ref, o_ref, *, scale):
    # q/k/v: (G, L, Dh) bf16; mask: (Lq, Lk) additive f32
    s = jnp.einsum("gqd,gkd->gqk", q_ref[...], k_ref[...],
                   preferred_element_type=jnp.float32) * scale
    s = s + m_ref[...][None, :, :]
    mx = jnp.max(s, axis=-1, keepdims=True)
    p = jnp.exp(s - mx)
    denom = jnp.sum(p, axis=-1, keepdims=True)
    p = p * pl.reciprocal(denom, approx=True)
    o = jnp.einsum("gqk,gkd->gqd", p.astype(jnp.bfloat16), v_ref[...],
                   preferred_element_type=jnp.float32)
    o_ref[...] = o.astype(o_ref.dtype)


def pallas_attention(q, k, v, mask_add):
    """q: (BH, Lq, Dh), k/v: (BH, Lk, Dh), mask_add: (Lq, Lk). Groups of heads
    are processed per grid step (amortizes step overhead, fills vregs)."""
    BH, Lq, Dh = q.shape
    Lk = k.shape[1]
    scale = 1.0 / math.sqrt(Dh)
    n_groups = 2 if (BH % 2 == 0 and BH >= 2) else 1   # lets v7x split over 2 TCs
    G = BH // n_groups
    return pl.pallas_call(
        functools.partial(_attn_kernel, scale=scale),
        grid=(n_groups,),
        in_specs=[
            pl.BlockSpec((G, Lq, Dh), lambda i: (i, 0, 0)),
            pl.BlockSpec((G, Lk, Dh), lambda i: (i, 0, 0)),
            pl.BlockSpec((G, Lk, Dh), lambda i: (i, 0, 0)),
            pl.BlockSpec((Lq, Lk), lambda i: (0, 0)),
        ],
        out_specs=pl.BlockSpec((G, Lq, Dh), lambda i: (i, 0, 0)),
        out_shape=jax.ShapeDtypeStruct((BH, Lq, Dh), jnp.float32),
        compiler_params=pltpu.CompilerParams(
            dimension_semantics=("parallel",),
            vmem_limit_bytes=_VMEM_LIMIT),
    )(q.astype(jnp.bfloat16), k.astype(jnp.bfloat16), v.astype(jnp.bfloat16),
      mask_add.astype(jnp.float32))


# ------------------------- Transformer building blocks -------------------------

def multi_head_attention(query, memory, p, mask_add, num_heads, self_attn):
    B, Lq, D = query.shape
    Lk = memory.shape[1]
    Dh = D // num_heads
    q2d = query.reshape(-1, D)
    if self_attn:
        # single fused QKV projection: (M, 3D)
        qkv = pallas_linear(q2d, p["in_proj_wt"], p["in_proj_b"])
        q, k, v = jnp.split(qkv, 3, axis=-1)
    else:
        # q from target, fused KV projection from encoder memory
        q = pallas_linear(q2d, p["in_proj_wt"][:, :D], p["in_proj_b"][:D])
        kvp = pallas_linear(memory.reshape(-1, D), p["in_proj_wt"][:, D:],
                            p["in_proj_b"][D:])
        k, v = jnp.split(kvp, 2, axis=-1)

    def to_heads(x, L):
        return x.reshape(B, L, num_heads, Dh).transpose(0, 2, 1, 3).reshape(
            B * num_heads, L, Dh)

    oh = pallas_attention(to_heads(q, Lq), to_heads(k, Lk), to_heads(v, Lk), mask_add)
    o = oh.reshape(B, num_heads, Lq, Dh).transpose(0, 2, 1, 3).reshape(B * Lq, D)
    o = pallas_linear(o, p["out_proj_wt"], p["out_proj_b"])
    return o.reshape(B, Lq, D)


def encoder_layer(x, p, mask_add, num_heads):
    B, S, D = x.shape
    sa = multi_head_attention(x, x, p["self_attn"], mask_add, num_heads, True)
    x = pallas_add_layernorm(x.reshape(-1, D), sa.reshape(-1, D),
                             p["norm1_g"], p["norm1_b"]).reshape(B, S, D)
    h = pallas_ffn(x.reshape(-1, D), p["lin1_wt"], p["lin1_b"],
                   p["lin2_wt"], p["lin2_b"])
    x = pallas_add_layernorm(x.reshape(-1, D), h,
                             p["norm2_g"], p["norm2_b"]).reshape(B, S, D)
    return x


def decoder_layer(x, memory, p, tgt_mask_add, mem_mask_add, num_heads):
    B, S, D = x.shape
    sa = multi_head_attention(x, x, p["self_attn"], tgt_mask_add, num_heads, True)
    x = pallas_add_layernorm(x.reshape(-1, D), sa.reshape(-1, D),
                             p["norm1_g"], p["norm1_b"]).reshape(B, S, D)
    ca = multi_head_attention(x, memory, p["cross_attn"], mem_mask_add, num_heads, False)
    x = pallas_add_layernorm(x.reshape(-1, D), ca.reshape(-1, D),
                             p["norm2_g"], p["norm2_b"]).reshape(B, S, D)
    h = pallas_ffn(x.reshape(-1, D), p["lin1_wt"], p["lin1_b"],
                   p["lin2_wt"], p["lin2_b"])
    x = pallas_add_layernorm(x.reshape(-1, D), h,
                             p["norm3_g"], p["norm3_b"]).reshape(B, S, D)
    return x


def transformer_forward(src, tgt, p, mask_add, num_heads):
    B, S, D = src.shape
    mem = src
    for lp in p["enc_layers"]:
        mem = encoder_layer(mem, lp, mask_add, num_heads)
    mem = pallas_layernorm(mem.reshape(-1, D), p["enc_norm_g"], p["enc_norm_b"]).reshape(B, S, D)
    out = tgt
    for lp in p["dec_layers"]:
        # nn.Transformer is called with memory_mask=over_head_mask in the spec,
        # so the same causal mask is applied to cross-attention too.
        out = decoder_layer(out, mem, lp, mask_add, mask_add, num_heads)
    out = pallas_layernorm(out.reshape(-1, D), p["dec_norm_g"], p["dec_norm_b"]).reshape(B, S, D)
    return out


# ----------------------------- Parameter init -----------------------------

def init_params(key, seq_len, num_layers, d_ffn, d_model, num_heads, n_questions):
    keys = iter(jax.random.split(key, 512))

    def nrm(shape, scale=0.02):
        return scale * jax.random.normal(next(keys), shape, jnp.float32)

    def lin_t(in_f, out_f):
        # Linear weight stored pre-transposed as (in_features, out_features),
        # pre-cast to bf16 for MXU consumption (no per-call transpose/cast).
        return nrm((in_f, out_f)).astype(jnp.bfloat16)

    def zeros(shape):
        return jnp.zeros(shape, jnp.float32)

    def ones(shape):
        return jnp.ones(shape, jnp.float32)

    def mha():
        return {
            "in_proj_wt": lin_t(d_model, 3 * d_model),   # fused QKV
            "in_proj_b": zeros((3 * d_model,)),
            "out_proj_wt": lin_t(d_model, d_model),
            "out_proj_b": zeros((d_model,)),
        }

    def enc_layer():
        return {
            "self_attn": mha(),
            "lin1_wt": lin_t(d_model, d_ffn), "lin1_b": zeros((d_ffn,)),
            "lin2_wt": lin_t(d_ffn, d_model), "lin2_b": zeros((d_model,)),
            "norm1_g": ones((d_model,)), "norm1_b": zeros((d_model,)),
            "norm2_g": ones((d_model,)), "norm2_b": zeros((d_model,)),
        }

    def dec_layer():
        d = enc_layer()
        d["cross_attn"] = mha()
        d["norm3_g"] = ones((d_model,))
        d["norm3_b"] = zeros((d_model,))
        return d

    params = {
        "d_model": d_model,
        "pos_emb": nrm((seq_len, d_model)),
        "contentId_emb": nrm((n_questions + 1, d_model)),
        "answerCorr_emb": nrm((3, d_model)),
        # nn.Linear(1, d_model, bias=False) weights stored as (d_model,)
        "timelag_w": nrm((d_model,)),
        "elapsedT_w": nrm((d_model,)),
        "itemAver_w": nrm((d_model,)),
        "userAver_w": nrm((d_model,)),
        "tagAver_w": nrm((d_model,)),
        "emb_dense1_wt": lin_t(2 * d_model, d_model), "emb_dense1_b": zeros((d_model,)),
        "emb_dense2_wt": lin_t(6 * d_model, d_model), "emb_dense2_b": zeros((d_model,)),
        "transformer": {
            "enc_layers": [enc_layer() for _ in range(num_layers)],
            "dec_layers": [dec_layer() for _ in range(num_layers)],
            "enc_norm_g": ones((d_model,)), "enc_norm_b": zeros((d_model,)),
            "dec_norm_g": ones((d_model,)), "dec_norm_b": zeros((d_model,)),
        },
        "ln_g": ones((d_model,)), "ln_b": zeros((d_model,)),       # shared self.layer_norm
        "ffn_lin1_wt": lin_t(d_model, d_ffn), "ffn_lin1_b": zeros((d_ffn,)),
        "ffn_lin2_wt": lin_t(d_ffn, d_model), "ffn_lin2_b": zeros((d_model,)),
        "final_w": nrm((1, d_model)), "final_b": zeros((1,)),
    }
    return params


# ----------------------------- SaintPlus forward -----------------------------

def saint_plus_forward(params, content_ids, time_lag, ques_elapsed_time,
                       item_aver, user_aver, tag_aver, answer_correct, *, num_heads):
    B, S = content_ids.shape
    D = params["d_model"]

    content_emb = jnp.take(params["contentId_emb"], content_ids, axis=0)     # (B,S,D)
    ans_emb = jnp.take(params["answerCorr_emb"], answer_correct, axis=0)     # (B,S,D)

    def scalar_emb(x, w):        # Linear(1, D, bias=False) on log(x + 1)
        return jnp.log(x + 1.0)[..., None] * w[None, None, :]

    time_lag_e = scalar_emb(time_lag, params["timelag_w"])
    elapsed_e = scalar_emb(ques_elapsed_time, params["elapsedT_w"])
    item_e = scalar_emb(item_aver, params["itemAver_w"])
    user_e = scalar_emb(user_aver, params["userAver_w"])
    tag_e = scalar_emb(tag_aver, params["tagAver_w"])

    enc_in = jnp.concatenate([content_emb, time_lag_e], axis=-1).reshape(-1, 2 * D)
    enc_val = pallas_linear(enc_in, params["emb_dense1_wt"], params["emb_dense1_b"]).reshape(B, S, D)
    dec_in = jnp.concatenate([time_lag_e, elapsed_e, item_e, user_e, tag_e, ans_emb],
                             axis=-1).reshape(-1, 6 * D)
    dec_val = pallas_linear(dec_in, params["emb_dense2_wt"], params["emb_dense2_b"]).reshape(B, S, D)

    pos = jnp.take(params["pos_emb"], jnp.arange(S), axis=0)[None]           # (1,S,D)
    enc_val = enc_val + pos
    dec_val = dec_val + pos

    # strict upper-triangular bool mask -> additive float mask (large finite
    # negative instead of -inf to avoid inf-inf NaN hazards)
    bool_mask = jnp.triu(jnp.ones((S, S), jnp.bool_), k=1)
    mask_add = jnp.where(bool_mask, -1e30, 0.0).astype(jnp.float32)

    dec_out = transformer_forward(enc_val, dec_val, params["transformer"], mask_add, num_heads)
    dec_out = pallas_layernorm(dec_out.reshape(-1, D), params["ln_g"], params["ln_b"])  # (B*S, D)

    # FFN head (dropout = identity in eval), fused lin1+ReLU+lin2
    ff = pallas_ffn(dec_out, params["ffn_lin1_wt"], params["ffn_lin1_b"],
                    params["ffn_lin2_wt"], params["ffn_lin2_b"])
    # fused: layer_norm(ff + dec_out) -> final Linear(D->1) -> sigmoid
    out = pallas_head(ff, dec_out, params["ln_g"], params["ln_b"],
                      params["final_w"], params["final_b"])
    return out.reshape(B, S)


# ----------------------------------- main -----------------------------------

if __name__ == "__main__":
    # Small shapes consistent with the module
    seq_len, num_layers, d_ffn, d_model, num_heads = 8, 2, 64, 32, 4
    n_questions = 100
    B = 2

    key = jax.random.PRNGKey(0)
    pkey, dkey = jax.random.split(key)
    params = init_params(pkey, seq_len, num_layers, d_ffn, d_model, num_heads, n_questions)

    ks = jax.random.split(dkey, 7)
    content_ids = jax.random.randint(ks[0], (B, seq_len), 0, n_questions + 1, dtype=jnp.int32)
    answer_correct = jax.random.randint(ks[1], (B, seq_len), 0, 3, dtype=jnp.int32)
    time_lag = jax.random.uniform(ks[2], (B, seq_len), jnp.float32, 0.0, 100.0)
    ques_elapsed_time = jax.random.uniform(ks[3], (B, seq_len), jnp.float32, 0.0, 50.0)
    item_aver = jax.random.uniform(ks[4], (B, seq_len), jnp.float32, 0.0, 1.0)
    user_aver = jax.random.uniform(ks[5], (B, seq_len), jnp.float32, 0.0, 1.0)
    tag_aver = jax.random.uniform(ks[6], (B, seq_len), jnp.float32, 0.0, 1.0)

    out = saint_plus_forward(params, content_ids, time_lag, ques_elapsed_time,
                             item_aver, user_aver, tag_aver, answer_correct,
                             num_heads=num_heads)
    out = jax.block_until_ready(out)
    assert out.shape == (B, seq_len)
    assert bool(jnp.all(jnp.isfinite(out)))
    assert bool(jnp.all((out >= 0.0) & (out <= 1.0)))
    print("KERNEL_OK")
</pallas_src>

<mosaic_0001>
module attributes {stable_mosaic.version = 11 : i64} {
  func.func @_linear_kernel(%arg0: i32, %arg1: i32, %arg2: memref<16x64xbf16, #tpu.memory_space<vmem>>, %arg3: memref<64x32xbf16, #tpu.memory_space<vmem>>, %arg4: memref<1x32xf32, #tpu.memory_space<vmem>>, %arg5: memref<16x32xf32, #tpu.memory_space<vmem>>) attributes {dimension_semantics = [#tpu.dimension_semantics<parallel>, #tpu.dimension_semantics<parallel>], iteration_bounds = array<i64: 1, 1>, scalar_prefetch = 0 : i64, scratch_operands = 0 : i64, tpu.core_type = #tpu.core_type<tc>, window_params = [{transform_indices = @transform_0, window_bounds = array<i64: 16, 64>}, {transform_indices = @transform_1, window_bounds = array<i64: 64, 32>}, {transform_indices = @transform_2, window_bounds = array<i64: 1, 32>}, {transform_indices = @transform_3, window_bounds = array<i64: 16, 32>}]} {
    %c0 = arith.constant 0 : index
    %c0_0 = arith.constant 0 : index
    %0 = vector.load %arg2[%c0, %c0_0] : memref<16x64xbf16, #tpu.memory_space<vmem>>, vector<16x64xbf16>
    %c0_1 = arith.constant 0 : index
    %c0_2 = arith.constant 0 : index
    %1 = vector.load %arg3[%c0_1, %c0_2] : memref<64x32xbf16, #tpu.memory_space<vmem>>, vector<64x32xbf16>
    %cst = arith.constant dense<0.000000e+00> : vector<16x32xf32>
    %2 = tpu.matmul %0, %1, %cst {dimension_numbers = #tpu.dot_dimension_numbers<[1], [0], [0], [1], [0, 0, 1, 1], [], []>} : vector<16x64xbf16>, vector<64x32xbf16>, vector<16x32xf32> -> vector<16x32xf32>
    %c0_3 = arith.constant 0 : index
    %c0_4 = arith.constant 0 : index
    %3 = vector.load %arg4[%c0_3, %c0_4] : memref<1x32xf32, #tpu.memory_space<vmem>>, vector<1x32xf32>
    %4 = vector.broadcast %3 : vector<1x32xf32> to vector<16x32xf32>
    %5 = arith.addf %2, %4 : vector<16x32xf32>
    %c0_5 = arith.constant 0 : index
    %c0_6 = arith.constant 0 : index
    %6 = vector.load %arg5[%c0_5, %c0_6] : memref<16x32xf32, #tpu.memory_space<vmem>>, vector<16x32xf32>
    tpu.vector_store %arg5[%c0_5, %c0_6], %5 {strides = array<i32>} : memref<16x32xf32, #tpu.memory_space<vmem>>, vector<16x32xf32>,
    return
  }
  func.func @transform_0(%arg0: i32, %arg1: i32) -> (i32, i32) {
    %c0_i32 = arith.constant 0 : i32
    %c0_i32_0 = arith.constant 0 : i32
    return %arg0, %c0_i32 : i32, i32
  }
  func.func @transform_1(%arg0: i32, %arg1: i32) -> (i32, i32) {
    %c0_i32 = arith.constant 0 : i32
    %c0_i32_0 = arith.constant 0 : i32
    return %c0_i32, %arg1 : i32, i32
  }
  func.func @transform_2(%arg0: i32, %arg1: i32) -> (i32, i32) {
    %c0_i32 = arith.constant 0 : i32
    %c0_i32_0 = arith.constant 0 : i32
    return %c0_i32, %arg1 : i32, i32
  }
  func.func @transform_3(%arg0: i32, %arg1: i32) -> (i32, i32) {
    %c0_i32 = arith.constant 0 : i32
    return %arg0, %arg1 : i32, i32
  }
}

</mosaic_0001>

<bundles_post_ra>
// kernel: tpu_custom_call.1
= control target key start
LH: loop header
LB: loop body
LE: loop exit
PB: predicated region body
PF: predicated region fallthrough
CT: control target
= control target key end

     0   :  { %v184_v1 = vmov 0.0   ;;  %vm185_vm0 = vmmov 0   ;;  %s239_s0 = inlined_call_operand.vmem [shape: bf16[16,64], index: 0, kind: input, shape index: {}]   ;;  %s240_s1 = inlined_call_operand.vmem [shape: bf16[64,32], index: 1, kind: input, shape index: {}]   ;;  %s241_s2 = inlined_call_operand.vmem [shape: f32[1,32], index: 2, kind: input, shape index: {}]   ;;  %s242_s3 = inlined_call_operand.hbm [shape: f32[16,32], index: 3, kind: output, shape index: {}]  }
   0x1   :  { %v155_v0 = vld [vmem:[%s240_s1] sm:$0xff]   ;;  %138 = vmatprep.subr.bf16.mxu0 %v184_v1  ;;  %v156_v2 = vld [vmem:[%s240_s1 + $0x8] sm:$0xff]   ;;  %146 = vmatprep.mubr.msk.bf16.mxu0 %vm185_vm0, %v184_v1 }
   0x2   :  { %139 = vmatpush3.bf16.msra.mxu0 %v155_v0 }
   0x3   :  { %140 = vmatprep.subr.bf16.mxu0 %v184_v1 }
   0x4   :  { %8 = vsyncpa [#allocation3], 0  ;;  %v157_v3 = vld [vmem:[%s240_s1 + $0x10] sm:$0xff]   ;;  %v158_v4 = vld [vmem:[%s240_s1 + $0x18] sm:$0xff]   ;;  %vm62_vm1 = vcmask 523264   ;;  %s186_s24 = smov [#allocation2]  }
   0x5   :  { %v159_v5 = vld [vmem:[%s239_s0] sm:$0xff]   ;;  %s115_s25 = sshll.u32 %s186_s24, 4  ;;  %vm107_vm2 = vcmask 261120   ;;  %s116_s25 = int_to_ptr.vmem [resolvable:$true] %s115_s25 }
   0x6   :  { %141 = vmatpush3.bf16.msra.mxu0 %v156_v2  ;;  %v126_v6 = vld [vmem:[%s241_s2] ss:$0 sm:$0xff]  ;;  %s160_s0 = scalar_lea.vmem %s116_s25, 256  ;;  %p165_p1 = scmp.lt.s32.totalorder %s116_s25, %s116_s25 }
   0x7   :  { %142 = vmatprep.subr.bf16.mxu0 %v184_v1  ;;  %p161_p0 = scmp.ne.s32.totalorder %s116_s25, %s160_s0  ;;  %p166_p2 = scmp.lt.s32.totalorder %s160_s0, %s160_s0 }
   0x9   :  { %p167_p3 = por %p166_p2, %p165_p1 }
   0xa   :  { %143 = vmatpush3.bf16.msra.mxu0 %v157_v3 }
   0xb   :  { %144 = vmatprep.subr.bf16.mxu0 %v184_v1  ;;  %p168_p4 = pnand %p167_p3, %p161_p0 }
   0xe   :  { %145 = vmatpush3.bf16.msra.mxu0 %v158_v4 }
  0x11   :  { %147 = vmatmul.mubr.msk.bf16.vlgmr.msra.gmra.mrb[0].mxu0 %vm62_vm1, %v159_v5 }
  0xe4   :  { %v100_v7 = vpop.f32.mrb[0].mxu0 }
  0xe5   :  { %v101_v8 = vadd.f32 %v126_v6, %v100_v7  ;;  %v148_v9 = vpop.f32.mrb[1].mxu0 }
  0xe6   :  { %v103_v10 = vpop.f32.mrb[2].mxu0 }
  0xe7   :  { %108 = vst.msk [vmem:[#allocation2] sm:$0xff] %vm107_vm2, %v101_v8  ;;  %v104_v11 = vadd.f32 %v126_v6, %v103_v10  ;;  %v149_v12 = vpop.f32.mrb[3].mxu0 }
  0xe9   :  { %109 = vst.msk [vmem:[#allocation2 + $0x8] sm:$0xff] %vm107_vm2, %v104_v11 }
  0xea   :  { %171 = shalt.err (!%p168_p4)
}
  0xeb   :  { %s172_s26 = scalar_lea.hbm %s242_s3, 256 }
  0xec   :  { %p173_p5 = scmp.ne.s32.totalorder %s242_s3, %s172_s26  ;;  %p176_p6 = scmp.lt.u32.totalorder %s172_s26, %s242_s3 }
  0xee   :  { %p178_p7 = pnand %p176_p6, %p173_p5 }
  0xf0   :  { %181 = shalt.err (!%p178_p7)
}
  0xf1   :  { %s187_s4 = smov 128   ;;  %s188_s5 = smov 8  }
  0xf2   :  { %121 = dma.vmem_to_hbm [thread:$0]  %s116_s25, 256, %s242_s3, [#allocation3], %s187_s4, %s187_s4, %s188_s5  }
  0xf3   :  { %182 = dma.done.wait [#allocation3], 256  }
  0xf4   :  { %183 = vsyncadd [#allocation3], 4294967040 }
  0xf5   :  { %125 = vsyncpa [#allocation3], 1 }

</bundles_post_ra>
